<compile_context>
chip_gen: v7x
topology: tpu7x:2x2x1
jax: 0.10.0
libtpu: 0.0.40
codegen_flags: <defaults>
</compile_context>

<pallas_src>
import jax
import jax.numpy as jnp
from jax.experimental import pallas as pl
from jax.experimental.pallas import tpu as pltpu


def rnn_kernel(x_ref, h0_ref, wih_ref, whh_ref, bias_ref, wfc_ref, bfc_ref,
               out_ref, hn_ref, hstack_ref):
    """
    x_ref     : (T*B, I)  VMEM bf16   time-major (row = t*B + b), prepared in wrapper
    h0_ref    : (B, H)    VMEM f32
    wih_ref   : (I, H)    VMEM bf16   (= W_ih^T)
    whh_ref   : (H, H)    VMEM bf16   (= W_hh^T)
    bias_ref  : (1, H)    VMEM f32    (= b_ih + b_hh, folded once in wrapper)
    wfc_ref   : (H, O)    VMEM bf16   (= W_fc^T)
    bfc_ref   : (1, O)    VMEM f32
    out_ref   : (T*B, O)  VMEM f32    time-major FC output (single store)
    hn_ref    : (B, H)    VMEM f32    final hidden state
    hstack_ref: (T*B, H)  VMEM f32    scratch holding every h_t at row t*B + b
    """
    B = h0_ref.shape[0]
    TB = x_ref.shape[0]
    T = TB // B

    # Read every weight / bias ref exactly once, outside the time loop.
    wih = wih_ref[...]
    whh = whh_ref[...]
    wfc = wfc_ref[...]
    bias = bias_ref[...]

    # ---- Hoisted input projection: one fused (T*B, I) x (I, H) bf16 matmul ----------
    # f32 accumulation + f32 bias fold; independent of h, so fully off the serial chain.
    xp = jnp.dot(x_ref[...], wih, preferred_element_type=jnp.float32) + bias   # (T*B, H) f32

    # ---- Recurrence: only h @ W_hh^T + tanh stays in the (fully unrolled) loop ------
    h = h0_ref[...]                                   # (B, H) f32 state
    for t in range(T):                                # static unroll — T known at trace time
        pre = jnp.dot(h.astype(jnp.bfloat16), whh,    # single-pass bf16 MXU, f32 accumulate
                      preferred_element_type=jnp.float32)
        h = jnp.tanh(pre + xp[t * B:(t + 1) * B, :])  # static contiguous slice (no concat)
        # One contiguous multi-row store per step; nothing in-loop reads it, so these
        # stores drain in slack cycles off the recurrence dependency chain.
        hstack_ref[t * B:(t + 1) * B, :] = h

    hn_ref[...] = h

    # ---- FC head: single batched matmul over all T*B rows, single store -------------
    out_ref[...] = (jnp.dot(hstack_ref[...].astype(jnp.bfloat16), wfc,
                            preferred_element_type=jnp.float32) + bfc_ref[...])


@jax.jit
def rnn_forward(x, hidden, params):
    """x: (B, T, I) f32, hidden: (1, B, H) f32. Returns (out (B*T, O), hidden (1, B, H))."""
    B, T, I = x.shape
    H = params["w_hh"].shape[0]
    O = params["w_fc"].shape[0]

    # One-time, tiny layout/dtype prep (blessed by the review): time-major x + bf16 MXU
    # operands.  State / biases stay f32.
    x_tm = jnp.transpose(x, (1, 0, 2)).reshape(T * B, I).astype(jnp.bfloat16)  # row = t*B + b
    h0 = hidden[0].astype(jnp.float32)                                          # (B, H)
    wih_t = params["w_ih"].T.astype(jnp.bfloat16)                               # (I, H)
    whh_t = params["w_hh"].T.astype(jnp.bfloat16)                               # (H, H)
    wfc_t = params["w_fc"].T.astype(jnp.bfloat16)                               # (H, O)
    bias = (params["b_ih"] + params["b_hh"]).reshape(1, H).astype(jnp.float32)
    bfc = params["b_fc"].reshape(1, O).astype(jnp.float32)

    flops = 2 * T * B * (I * H + H * H + H * O)
    bytes_accessed = (x_tm.size * 2 + wih_t.size * 2 + whh_t.size * 2 + wfc_t.size * 2
                      + (h0.size + bias.size + bfc.size) * 4
                      + (T * B * O + B * H) * 4)
    vmem = pl.BlockSpec(memory_space=pltpu.MemorySpace.VMEM)

    out_tm, h_n = pl.pallas_call(
        rnn_kernel,
        out_shape=(
            jax.ShapeDtypeStruct((T * B, O), jnp.float32),   # time-major FC output
            jax.ShapeDtypeStruct((B, H), jnp.float32),
        ),
        in_specs=[vmem] * 7,
        out_specs=(vmem, vmem),
        scratch_shapes=[pltpu.VMEM((T * B, H), jnp.float32)],
        cost_estimate=pl.CostEstimate(flops=flops, transcendentals=T * B * H,
                                      bytes_accessed=bytes_accessed),
    )(x_tm, h0, wih_t, whh_t, bias, wfc_t, bfc)

    # Single tiny permutation back to PyTorch's b-major flatten order (row = b*T + t).
    out = jnp.transpose(out_tm.reshape(T, B, O), (1, 0, 2)).reshape(B * T, O)
    return out, h_n[None]                                    # hidden: (1, B, H)


def init_params(key, input_size, hidden_dim, output_size):
    """Deterministic init matching PyTorch parameter shapes (uniform, RNN-style scale)."""
    ks = jax.random.split(key, 6)
    s = 1.0 / jnp.sqrt(hidden_dim)
    return {
        "w_ih": jax.random.uniform(ks[0], (hidden_dim, input_size), jnp.float32, -s, s),
        "w_hh": jax.random.uniform(ks[1], (hidden_dim, hidden_dim), jnp.float32, -s, s),
        "b_ih": jax.random.uniform(ks[2], (hidden_dim,), jnp.float32, -s, s),
        "b_hh": jax.random.uniform(ks[3], (hidden_dim,), jnp.float32, -s, s),
        "w_fc": jax.random.uniform(ks[4], (output_size, hidden_dim), jnp.float32, -s, s),
        "b_fc": jax.random.uniform(ks[5], (output_size,), jnp.float32, -s, s),
    }


def _reference_forward(x, hidden, params, matmul_dtype=jnp.float32):
    """Pure-JAX reference of the PyTorch forward.

    With matmul_dtype=bf16 it mirrors the kernel's MXU operand rounding exactly
    (f32 accumulation / state / tanh), giving a tight structural check.
    """
    B, T, I = x.shape
    H = params["w_hh"].shape[0]
    md = matmul_dtype
    wih = params["w_ih"].T.astype(md)
    whh = params["w_hh"].T.astype(md)
    wfc = params["w_fc"].T.astype(md)
    bias = params["b_ih"] + params["b_hh"]
    h = hidden[0].astype(jnp.float32)
    outs = []
    for t in range(T):
        pre = (jnp.dot(x[:, t, :].astype(md), wih, preferred_element_type=jnp.float32)
               + jnp.dot(h.astype(md), whh, preferred_element_type=jnp.float32)
               + bias)
        h = jnp.tanh(pre)
        outs.append(h)
    r_out = jnp.stack(outs, axis=1)                      # (B, T, H), batch_first
    flat = r_out.reshape(-1, H)                          # b-major, t-minor
    out = (jnp.dot(flat.astype(md), wfc, preferred_element_type=jnp.float32)
           + params["b_fc"])
    return out, h[None]


if __name__ == "__main__":
    B, T = 2, 8
    input_size, hidden_dim, output_size = 15, 32, 9

    key = jax.random.PRNGKey(0)
    k_x, k_h, k_p = jax.random.split(key, 3)
    x = jax.random.normal(k_x, (B, T, input_size), dtype=jnp.float32)
    hidden = jax.random.normal(k_h, (1, B, hidden_dim), dtype=jnp.float32)
    params = init_params(k_p, input_size, hidden_dim, output_size)

    out, h_n = rnn_forward(x, hidden, params)
    out = jax.block_until_ready(out)
    h_n = jax.block_until_ready(h_n)

    assert out.shape == (B * T, output_size)
    assert h_n.shape == (1, B, hidden_dim)

    # Tight structural check: reference with the SAME bf16 matmul operands (verifies the
    # time-major compute + b-major output contract after the reorder).
    ref_bo, ref_bh = _reference_forward(x, hidden, params, matmul_dtype=jnp.bfloat16)
    assert jnp.allclose(out, ref_bo, atol=1e-3, rtol=1e-3), "output mismatch (bf16-matched ref)"
    assert jnp.allclose(h_n, ref_bh, atol=1e-3, rtol=1e-3), "hidden mismatch (bf16-matched ref)"

    # Fidelity check vs the full-f32 PyTorch-style reference: bf16 MXU operands with f32
    # accumulation / f32 state & tanh -> expect ~1e-2-scale deviation (per review), not 1e-5.
    ref_out, ref_h = _reference_forward(x, hidden, params)
    assert jnp.allclose(out, ref_out, atol=1e-1), "output mismatch (f32 ref)"
    assert jnp.allclose(h_n, ref_h, atol=1e-1), "hidden mismatch (f32 ref)"

    print("KERNEL_OK")
</pallas_src>

<mosaic_0001>
module attributes {stable_mosaic.version = 11 : i64} {
  func.func @rnn_kernel(%arg0: memref<16x15xbf16, #tpu.memory_space<vmem>>, %arg1: memref<2x32xf32, #tpu.memory_space<vmem>>, %arg2: memref<15x32xbf16, #tpu.memory_space<vmem>>, %arg3: memref<32x32xbf16, #tpu.memory_space<vmem>>, %arg4: memref<1x32xf32, #tpu.memory_space<vmem>>, %arg5: memref<32x9xbf16, #tpu.memory_space<vmem>>, %arg6: memref<1x9xf32, #tpu.memory_space<vmem>>, %arg7: memref<16x9xf32, #tpu.memory_space<vmem>>, %arg8: memref<2x32xf32, #tpu.memory_space<vmem>>, %arg9: memref<16x32xf32, #tpu.memory_space<vmem>>) attributes {dimension_semantics = [], scalar_prefetch = 0 : i64, scratch_operands = 1 : i64, tpu.core_type = #tpu.core_type<tc>} {
    %c0 = arith.constant 0 : index
    %c0_0 = arith.constant 0 : index
    %0 = vector.load %arg2[%c0, %c0_0] : memref<15x32xbf16, #tpu.memory_space<vmem>>, vector<15x32xbf16>
    %c0_1 = arith.constant 0 : index
    %c0_2 = arith.constant 0 : index
    %1 = vector.load %arg3[%c0_1, %c0_2] : memref<32x32xbf16, #tpu.memory_space<vmem>>, vector<32x32xbf16>
    %c0_3 = arith.constant 0 : index
    %c0_4 = arith.constant 0 : index
    %2 = vector.load %arg5[%c0_3, %c0_4] : memref<32x9xbf16, #tpu.memory_space<vmem>>, vector<32x9xbf16>
    %c0_5 = arith.constant 0 : index
    %c0_6 = arith.constant 0 : index
    %3 = vector.load %arg4[%c0_5, %c0_6] : memref<1x32xf32, #tpu.memory_space<vmem>>, vector<1x32xf32>
    %c0_7 = arith.constant 0 : index
    %c0_8 = arith.constant 0 : index
    %4 = vector.load %arg0[%c0_7, %c0_8] : memref<16x15xbf16, #tpu.memory_space<vmem>>, vector<16x15xbf16>
    %cst = arith.constant dense<0.000000e+00> : vector<16x32xf32>
    %5 = tpu.matmul %4, %0, %cst {dimension_numbers = #tpu.dot_dimension_numbers<[1], [0], [0], [1], [0, 0, 1, 1], [], []>} : vector<16x15xbf16>, vector<15x32xbf16>, vector<16x32xf32> -> vector<16x32xf32>
    %6 = vector.broadcast %3 : vector<1x32xf32> to vector<16x32xf32>
    %7 = arith.addf %5, %6 : vector<16x32xf32>
    %c0_9 = arith.constant 0 : index
    %c0_10 = arith.constant 0 : index
    %8 = vector.load %arg1[%c0_9, %c0_10] : memref<2x32xf32, #tpu.memory_space<vmem>>, vector<2x32xf32>
    %9 = arith.truncf %8 : vector<2x32xf32> to vector<2x32xbf16>
    %cst_11 = arith.constant dense<0.000000e+00> : vector<2x32xf32>
    %10 = tpu.matmul %9, %1, %cst_11 {dimension_numbers = #tpu.dot_dimension_numbers<[1], [0], [0], [1], [0, 0, 1, 1], [], []>} : vector<2x32xbf16>, vector<32x32xbf16>, vector<2x32xf32> -> vector<2x32xf32>
    %11 = vector.extract_strided_slice %7 {offsets = [0, 0], sizes = [2, 32], strides = [1, 1]} : vector<16x32xf32> to vector<2x32xf32>
    %12 = arith.addf %10, %11 : vector<2x32xf32>
    %13 = math.tanh %12 : vector<2x32xf32>
    %c0_12 = arith.constant 0 : index
    %c0_13 = arith.constant 0 : index
    %14 = vector.load %arg9[%c0_12, %c0_13] : memref<16x32xf32, #tpu.memory_space<vmem>>, vector<2x32xf32>
    tpu.vector_store %arg9[%c0_12, %c0_13], %13 {strides = array<i32>} : memref<16x32xf32, #tpu.memory_space<vmem>>, vector<2x32xf32>,
    %15 = arith.truncf %13 : vector<2x32xf32> to vector<2x32xbf16>
    %cst_14 = arith.constant dense<0.000000e+00> : vector<2x32xf32>
    %16 = tpu.matmul %15, %1, %cst_14 {dimension_numbers = #tpu.dot_dimension_numbers<[1], [0], [0], [1], [0, 0, 1, 1], [], []>} : vector<2x32xbf16>, vector<32x32xbf16>, vector<2x32xf32> -> vector<2x32xf32>
    %17 = vector.extract_strided_slice %7 {offsets = [2, 0], sizes = [2, 32], strides = [1, 1]} : vector<16x32xf32> to vector<2x32xf32>
    %18 = arith.addf %16, %17 : vector<2x32xf32>
    %19 = math.tanh %18 : vector<2x32xf32>
    %c2 = arith.constant 2 : index
    %c0_15 = arith.constant 0 : index
    %20 = vector.load %arg9[%c2, %c0_15] : memref<16x32xf32, #tpu.memory_space<vmem>>, vector<2x32xf32>
    tpu.vector_store %arg9[%c2, %c0_15], %19 {strides = array<i32>} : memref<16x32xf32, #tpu.memory_space<vmem>>, vector<2x32xf32>,
    %21 = arith.truncf %19 : vector<2x32xf32> to vector<2x32xbf16>
    %cst_16 = arith.constant dense<0.000000e+00> : vector<2x32xf32>
    %22 = tpu.matmul %21, %1, %cst_16 {dimension_numbers = #tpu.dot_dimension_numbers<[1], [0], [0], [1], [0, 0, 1, 1], [], []>} : vector<2x32xbf16>, vector<32x32xbf16>, vector<2x32xf32> -> vector<2x32xf32>
    %23 = vector.extract_strided_slice %7 {offsets = [4, 0], sizes = [2, 32], strides = [1, 1]} : vector<16x32xf32> to vector<2x32xf32>
    %24 = arith.addf %22, %23 : vector<2x32xf32>
    %25 = math.tanh %24 : vector<2x32xf32>
    %c4 = arith.constant 4 : index
    %c0_17 = arith.constant 0 : index
    %26 = vector.load %arg9[%c4, %c0_17] : memref<16x32xf32, #tpu.memory_space<vmem>>, vector<2x32xf32>
    tpu.vector_store %arg9[%c4, %c0_17], %25 {strides = array<i32>} : memref<16x32xf32, #tpu.memory_space<vmem>>, vector<2x32xf32>,
    %27 = arith.truncf %25 : vector<2x32xf32> to vector<2x32xbf16>
    %cst_18 = arith.constant dense<0.000000e+00> : vector<2x32xf32>
    %28 = tpu.matmul %27, %1, %cst_18 {dimension_numbers = #tpu.dot_dimension_numbers<[1], [0], [0], [1], [0, 0, 1, 1], [], []>} : vector<2x32xbf16>, vector<32x32xbf16>, vector<2x32xf32> -> vector<2x32xf32>
    %29 = vector.extract_strided_slice %7 {offsets = [6, 0], sizes = [2, 32], strides = [1, 1]} : vector<16x32xf32> to vector<2x32xf32>
    %30 = arith.addf %28, %29 : vector<2x32xf32>
    %31 = math.tanh %30 : vector<2x32xf32>
    %c6 = arith.constant 6 : index
    %c0_19 = arith.constant 0 : index
    %32 = vector.load %arg9[%c6, %c0_19] : memref<16x32xf32, #tpu.memory_space<vmem>>, vector<2x32xf32>
    tpu.vector_store %arg9[%c6, %c0_19], %31 {strides = array<i32>} : memref<16x32xf32, #tpu.memory_space<vmem>>, vector<2x32xf32>,
    %33 = arith.truncf %31 : vector<2x32xf32> to vector<2x32xbf16>
    %cst_20 = arith.constant dense<0.000000e+00> : vector<2x32xf32>
    %34 = tpu.matmul %33, %1, %cst_20 {dimension_numbers = #tpu.dot_dimension_numbers<[1], [0], [0], [1], [0, 0, 1, 1], [], []>} : vector<2x32xbf16>, vector<32x32xbf16>, vector<2x32xf32> -> vector<2x32xf32>
    %35 = vector.extract_strided_slice %7 {offsets = [8, 0], sizes = [2, 32], strides = [1, 1]} : vector<16x32xf32> to vector<2x32xf32>
    %36 = arith.addf %34, %35 : vector<2x32xf32>
    %37 = math.tanh %36 : vector<2x32xf32>
    %c8 = arith.constant 8 : index
    %c0_21 = arith.constant 0 : index
    %38 = vector.load %arg9[%c8, %c0_21] : memref<16x32xf32, #tpu.memory_space<vmem>>, vector<2x32xf32>
    tpu.vector_store %arg9[%c8, %c0_21], %37 {strides = array<i32>} : memref<16x32xf32, #tpu.memory_space<vmem>>, vector<2x32xf32>,
    %39 = arith.truncf %37 : vector<2x32xf32> to vector<2x32xbf16>
    %cst_22 = arith.constant dense<0.000000e+00> : vector<2x32xf32>
    %40 = tpu.matmul %39, %1, %cst_22 {dimension_numbers = #tpu.dot_dimension_numbers<[1], [0], [0], [1], [0, 0, 1, 1], [], []>} : vector<2x32xbf16>, vector<32x32xbf16>, vector<2x32xf32> -> vector<2x32xf32>
    %41 = vector.extract_strided_slice %7 {offsets = [10, 0], sizes = [2, 32], strides = [1, 1]} : vector<16x32xf32> to vector<2x32xf32>
    %42 = arith.addf %40, %41 : vector<2x32xf32>
    %43 = math.tanh %42 : vector<2x32xf32>
    %c10 = arith.constant 10 : index
    %c0_23 = arith.constant 0 : index
    %44 = vector.load %arg9[%c10, %c0_23] : memref<16x32xf32, #tpu.memory_space<vmem>>, vector<2x32xf32>
    tpu.vector_store %arg9[%c10, %c0_23], %43 {strides = array<i32>} : memref<16x32xf32, #tpu.memory_space<vmem>>, vector<2x32xf32>,
    %45 = arith.truncf %43 : vector<2x32xf32> to vector<2x32xbf16>
    %cst_24 = arith.constant dense<0.000000e+00> : vector<2x32xf32>
    %46 = tpu.matmul %45, %1, %cst_24 {dimension_numbers = #tpu.dot_dimension_numbers<[1], [0], [0], [1], [0, 0, 1, 1], [], []>} : vector<2x32xbf16>, vector<32x32xbf16>, vector<2x32xf32> -> vector<2x32xf32>
    %47 = vector.extract_strided_slice %7 {offsets = [12, 0], sizes = [2, 32], strides = [1, 1]} : vector<16x32xf32> to vector<2x32xf32>
    %48 = arith.addf %46, %47 : vector<2x32xf32>
    %49 = math.tanh %48 : vector<2x32xf32>
    %c12 = arith.constant 12 : index
    %c0_25 = arith.constant 0 : index
    %50 = vector.load %arg9[%c12, %c0_25] : memref<16x32xf32, #tpu.memory_space<vmem>>, vector<2x32xf32>
    tpu.vector_store %arg9[%c12, %c0_25], %49 {strides = array<i32>} : memref<16x32xf32, #tpu.memory_space<vmem>>, vector<2x32xf32>,
    %51 = arith.truncf %49 : vector<2x32xf32> to vector<2x32xbf16>
    %cst_26 = arith.constant dense<0.000000e+00> : vector<2x32xf32>
    %52 = tpu.matmul %51, %1, %cst_26 {dimension_numbers = #tpu.dot_dimension_numbers<[1], [0], [0], [1], [0, 0, 1, 1], [], []>} : vector<2x32xbf16>, vector<32x32xbf16>, vector<2x32xf32> -> vector<2x32xf32>
    %53 = vector.extract_strided_slice %7 {offsets = [14, 0], sizes = [2, 32], strides = [1, 1]} : vector<16x32xf32> to vector<2x32xf32>
    %54 = arith.addf %52, %53 : vector<2x32xf32>
    %55 = math.tanh %54 : vector<2x32xf32>
    %c14 = arith.constant 14 : index
    %c0_27 = arith.constant 0 : index
    %56 = vector.load %arg9[%c14, %c0_27] : memref<16x32xf32, #tpu.memory_space<vmem>>, vector<2x32xf32>
    tpu.vector_store %arg9[%c14, %c0_27], %55 {strides = array<i32>} : memref<16x32xf32, #tpu.memory_space<vmem>>, vector<2x32xf32>,
    %c0_28 = arith.constant 0 : index
    %c0_29 = arith.constant 0 : index
    %57 = vector.load %arg8[%c0_28, %c0_29] : memref<2x32xf32, #tpu.memory_space<vmem>>, vector<2x32xf32>
    tpu.vector_store %arg8[%c0_28, %c0_29], %55 {strides = array<i32>} : memref<2x32xf32, #tpu.memory_space<vmem>>, vector<2x32xf32>,
    %c0_30 = arith.constant 0 : index
    %c0_31 = arith.constant 0 : index
    %58 = vector.load %arg9[%c0_30, %c0_31] : memref<16x32xf32, #tpu.memory_space<vmem>>, vector<16x32xf32>
    %59 = arith.truncf %58 : vector<16x32xf32> to vector<16x32xbf16>
    %cst_32 = arith.constant dense<0.000000e+00> : vector<16x9xf32>
    %60 = tpu.matmul %59, %2, %cst_32 {dimension_numbers = #tpu.dot_dimension_numbers<[1], [0], [0], [1], [0, 0, 1, 1], [], []>} : vector<16x32xbf16>, vector<32x9xbf16>, vector<16x9xf32> -> vector<16x9xf32>
    %c0_33 = arith.constant 0 : index
    %c0_34 = arith.constant 0 : index
    %61 = vector.load %arg6[%c0_33, %c0_34] : memref<1x9xf32, #tpu.memory_space<vmem>>, vector<1x9xf32>
    %62 = vector.broadcast %61 : vector<1x9xf32> to vector<16x9xf32>
    %63 = arith.addf %60, %62 : vector<16x9xf32>
    %c0_35 = arith.constant 0 : index
    %c0_36 = arith.constant 0 : index
    %64 = vector.load %arg7[%c0_35, %c0_36] : memref<16x9xf32, #tpu.memory_space<vmem>>, vector<16x9xf32>
    tpu.vector_store %arg7[%c0_35, %c0_36], %63 {strides = array<i32>} : memref<16x9xf32, #tpu.memory_space<vmem>>, vector<16x9xf32>,
    return
  }
}

</mosaic_0001>

<bundles_post_ra>
// kernel: rnn_forward.1
= control target key start
LH: loop header
LB: loop body
LE: loop exit
PB: predicated region body
PF: predicated region fallthrough
CT: control target
= control target key end

     0   :  { %v771_v1 = vmov 0.0   ;;  %vm63_vm0 = vcmask 1046528   ;;  %vm64_vm1 = vcmask 1047552   ;;  %v772_v4 = vmov 65535   ;;  %s948_s0 = inlined_call_operand.vmem [shape: bf16[16,15], index: 0, kind: input, shape index: {}]   ;;  %s949_s1 = inlined_call_operand.vmem [shape: f32[2,32], index: 1, kind: input, shape index: {}]   ;;  %s950_s2 = inlined_call_operand.vmem [shape: bf16[15,32], index: 2, kind: input, shape index: {}]   ;;  %s951_s3 = inlined_call_operand.vmem [shape: bf16[32,32], index: 3, kind: input, shape index: {}]   ;;  %s952_s4 = inlined_call_operand.vmem [shape: f32[1,32], index: 4, kind: input, shape index: {}]   ;;  %s953_s5 = inlined_call_operand.vmem [shape: bf16[32,9], index: 5, kind: input, shape index: {}]   ;;  %s954_s6 = inlined_call_operand.vmem [shape: f32[1,9], index: 6, kind: input, shape index: {}]   ;;  %s955_s7 = inlined_call_operand.vmem [shape: f32[16,9], index: 7, kind: output, shape index: {0}]   ;;  %s956_s8 = inlined_call_operand.hbm [shape: f32[2,32], index: 8, kind: output, shape index: {1}]  }
   0x1   :  { %v823_v0 = vld [vmem:[%s951_s3] sm:$0xff]   ;;  %649 = vmatprep.subr.bf16.mxu1 %v771_v1  ;;  %643 = vmatprep.subr.bf16.mxu0 %v771_v1  ;;  %v834_v3 = vld [vmem:[%s951_s3 + $0x8] sm:$0xff]   ;;  %v65_v5 = vsel %vm63_vm0, 4294967295, %v772_v4  ;;  %vm773_vm2 = vmmov 0   ;;  %vm125_vm3 = vcmask 261120   ;;  %vm59_vm4 = vcmask 121856  }
   0x2   :  { %v726_v2 = vld [vmem:[%s950_s2] sm:$0xff]   ;;  %650 = vmatpush3.bf16.msra.mxu1 %v823_v0  ;;  %645 = vmatprep.mubr.msk.bf16.mxu0 %vm773_vm2, %v771_v1  ;;  %v66_v6 = vsel %vm64_vm1, %v65_v5, 0 }
   0x3   :  { %651 = vmatprep.subr.bf16.mxu1 %v771_v1  ;;  %653 = vmatprep.mubr.msk.bf16.mxu1 %vm773_vm2, %v771_v1  ;;  %v111_v7 = vld [vmem:[%s949_s1] sm:$0x3]  ;;  %v68_v8 = vand.u32 %v726_v2, %v66_v6 }
   0x4   :  { %v728_v9 = vld [vmem:[%s948_s0] sm:$0xff]   ;;  %v112_v10 = vpack.c.bf16 %v111_v7, %v111_v7 }
   0x5   :  { %644 = vmatpush3.bf16.msra.mxu0 %v68_v8 }
   0x6   :  { %652 = vmatpush3.bf16.msra.mxu1 %v834_v3 }
   0x7   :  { %665 = vmatprep.subr.bf16.mxu1 %v771_v1 }
   0x8   :  { %14 = vsyncpa [#allocation4], 0  ;;  %657 = vmatprep.subr.bf16.mxu0 %v771_v1  ;;  %646 = vmatmul.mubr.msk.bf16.vlgmr.msra.gmra.mrb[0].mxu0 %vm59_vm4, %v728_v9  ;;  %v596_v11 = vld [vmem:[%s952_s4] ss:$0 sm:$0xff]  ;;  %vm170_vm5 = vcmask 254976  }
   0x9   :  { %654 = vmatmul.mubr.msk.bf16.vlgmr.msra.gmra.mrb[0].mxu1 %vm125_vm3, %v112_v10  ;;  %658 = vmatpush3.bf16.msra.mxu0 %v823_v0  ;;  %v729_v9 = vld [vmem:[%s953_s5] sm:$0xff]   ;;  %v730_v10 = vld [vmem:[%s953_s5 + $0x8] sm:$0xff]   ;;  %s774_s5 = smov [#allocation3]  }
   0xa   :  { %666 = vmatpush3.bf16.msra.mxu1 %v823_v0  ;;  %661 = vmatprep.mubr.msk.bf16.mxu0 %vm773_vm2, %v771_v1  ;;  %s586_s16 = sshll.u32 %s774_s5, 4  ;;  %s587_s16 = int_to_ptr.vmem [resolvable:$true] %s586_s16 }
   0xb   :  { %659 = vmatprep.subr.bf16.mxu0 %v771_v1  ;;  %667 = vmatprep.subr.bf16.mxu1 %v771_v1  ;;  %s747_s17 = scalar_lea.vmem %s587_s16, 32  ;;  %p752_p1 = scmp.lt.s32.totalorder %s587_s16, %s587_s16 }
   0xc   :  { %669 = vmatprep.mubr.msk.bf16.mxu1 %vm773_vm2, %v771_v1  ;;  %p748_p0 = scmp.ne.s32.totalorder %s587_s16, %s747_s17  ;;  %p753_p2 = scmp.lt.s32.totalorder %s747_s17, %s747_s17 }
   0xd   :  { %660 = vmatpush3.bf16.msra.mxu0 %v834_v3 }
   0xe   :  { %668 = vmatpush3.bf16.msra.mxu1 %v834_v3  ;;  %673 = vmatprep.subr.bf16.mxu0 %v771_v1  ;;  %p754_p3 = por %p753_p2, %p752_p1 }
   0xf   :  { %681 = vmatprep.subr.bf16.mxu1 %v771_v1 }
  0x10   :  { %p755_p4 = pnand %p754_p3, %p748_p0 }
  0xdb   :  { %v104_v13 = vpop.f32.mrb[0].mxu0 }
  0xdc   :  { %v163_v12 = vpop.f32.mrb[0].mxu1  ;;  %v105_v15 = vadd.f32 %v596_v11, %v104_v13  ;;  %v647_v16 = vpop.f32.mrb[1].mxu0 }
  0xdd   :  { %v655_v14 = vpop.f32.mrb[1].mxu1  ;;  %v107_v18 = vpop.f32.mrb[2].mxu0 }
  0xde   :  { %v166_v17 = vpop.f32.mrb[2].mxu1  ;;  %v866_v20 = vadd.f32 %v596_v11, %v107_v18  ;;  %v164_v21 = vadd.f32 %v163_v12, %v105_v15  ;;  %v648_v22 = vpop.f32.mrb[3].mxu0  ;;  %v174_v25 = vrot.slane %v105_v15, 2  ;;  %v222_v33 = vrot.slane %v105_v15, 4 }
  0xdf   :  { %v656_v19 = vpop.f32.mrb[3].mxu1  ;;  %v270_v41 = vrot.slane %v105_v15, 6 }
  0xe0   :  { %731 = vtanh.f32 %v164_v21  ;;  %v365_v56 = vrot.slane %v866_v20, 2  ;;  %v461_v11 = vrot.slane %v866_v20, 6 }
  0xea   :  { %v732_v23 = vpop.eup %731 }
  0xeb   :  { %171 = vst.msk [vmem:[#allocation2] sm:$0x3] %vm170_vm5, %v732_v23  ;;  %v172_v24 = vpack.c.bf16 %v732_v23, %v732_v23 }
  0xed   :  { %662 = vmatmul.mubr.msk.bf16.vlgmr.msra.gmra.mrb[4].mxu0 %vm125_vm3, %v172_v24 }
  0xee   :  { %674 = vmatpush3.bf16.msra.mxu0 %v823_v0  ;;  %677 = vmatprep.mubr.msk.bf16.mxu0 %vm773_vm2, %v771_v1 }
  0xef   :  { %675 = vmatprep.subr.bf16.mxu0 %v771_v1 }
  0xf2   :  { %676 = vmatpush3.bf16.msra.mxu0 %v834_v3 }
  0xf3   :  { %689 = vmatprep.subr.bf16.mxu0 %v771_v1 }
 0x1c0   :  { %v213_v26 = vpop.f32.mrb[4].mxu0 }
 0x1c1   :  { %v214_v27 = vadd.f32 %v213_v26, %v174_v25  ;;  %v663_v28 = vpop.f32.mrb[5].mxu0 }
 0x1c2   :  { %v216_v29 = vpop.f32.mrb[6].mxu0 }
 0x1c3   :  { %733 = vtanh.f32 %v214_v27  ;;  %v664_v30 = vpop.f32.mrb[7].mxu0 }
 0x1cd   :  { %v734_v31 = vpop.eup %733 }
 0x1ce   :  { %220 = vst.msk [vmem:[#allocation2 + $0x2] sm:$0x3] %vm170_vm5, %v734_v31  ;;  %v221_v32 = vpack.c.bf16 %v734_v31, %v734_v31 }
 0x1d0   :  { %670 = vmatmul.mubr.msk.bf16.vlgmr.msra.gmra.mrb[4].mxu1 %vm125_vm3, %v221_v32 }
 0x1d1   :  { %682 = vmatpush3.bf16.msra.mxu1 %v823_v0  ;;  %685 = vmatprep.mubr.msk.bf16.mxu1 %vm773_vm2, %v771_v1 }
 0x1d2   :  { %683 = vmatprep.subr.bf16.mxu1 %v771_v1 }
 0x1d5   :  { %684 = vmatpush3.bf16.msra.mxu1 %v834_v3 }
 0x1d6   :  { %697 = vmatprep.subr.bf16.mxu1 %v771_v1 }
 0x2a3   :  { %v261_v34 = vpop.f32.mrb[4].mxu1 }
 0x2a4   :  { %v262_v35 = vadd.f32 %v261_v34, %v222_v33  ;;  %v671_v36 = vpop.f32.mrb[5].mxu1 }
 0x2a5   :  { %v264_v37 = vpop.f32.mrb[6].mxu1 }
 0x2a6   :  { %735 = vtanh.f32 %v262_v35  ;;  %v672_v38 = vpop.f32.mrb[7].mxu1 }
 0x2b0   :  { %v736_v39 = vpop.eup %735 }
 0x2b1   :  { %268 = vst.msk [vmem:[#allocation2 + $0x4] sm:$0x3] %vm170_vm5, %v736_v39  ;;  %v269_v40 = vpack.c.bf16 %v736_v39, %v736_v39 }
 0x2b3   :  { %678 = vmatmul.mubr.msk.bf16.vlgmr.msra.gmra.mrb[8].mxu0 %vm125_vm3, %v269_v40 }
 0x2b4   :  { %690 = vmatpush3.bf16.msra.mxu0 %v823_v0  ;;  %693 = vmatprep.mubr.msk.bf16.mxu0 %vm773_vm2, %v771_v1 }
 0x2b5   :  { %691 = vmatprep.subr.bf16.mxu0 %v771_v1 }
 0x2b8   :  { %692 = vmatpush3.bf16.msra.mxu0 %v834_v3 }
 0x2b9   :  { %705 = vmatprep.subr.bf16.mxu0 %v771_v1 }
 0x386   :  { %v309_v42 = vpop.f32.mrb[8].mxu0 }
 0x387   :  { %v310_v43 = vadd.f32 %v309_v42, %v270_v41  ;;  %v679_v44 = vpop.f32.mrb[9].mxu0 }
 0x388   :  { %v312_v45 = vpop.f32.mrb[10].mxu0 }
 0x389   :  { %737 = vtanh.f32 %v310_v43  ;;  %v680_v46 = vpop.f32.mrb[11].mxu0 }
 0x393   :  { %v738_v47 = vpop.eup %737 }
 0x394   :  { %316 = vst.msk [vmem:[#allocation2 + $0x6] sm:$0x3] %vm170_vm5, %v738_v47  ;;  %v317_v48 = vpack.c.bf16 %v738_v47, %v738_v47 }
 0x396   :  { %686 = vmatmul.mubr.msk.bf16.vlgmr.msra.gmra.mrb[8].mxu1 %vm125_vm3, %v317_v48 }
 0x397   :  { %698 = vmatpush3.bf16.msra.mxu1 %v823_v0  ;;  %701 = vmatprep.mubr.msk.bf16.mxu1 %vm773_vm2, %v771_v1 }
 0x398   :  { %699 = vmatprep.subr.bf16.mxu1 %v771_v1 }
 0x39b   :  { %700 = vmatpush3.bf16.msra.mxu1 %v834_v3  ;;  %v509_v18 = vld [vmem:[#allocation2] sm:$0xff] }
 0x39c   :  { %713 = vmatprep.subr.bf16.mxu1 %v771_v1 }
 0x469   :  { %v355_v49 = vpop.f32.mrb[8].mxu1 }
 0x46a   :  { %v356_v50 = vadd.f32 %v355_v49, %v866_v20  ;;  %v687_v51 = vpop.f32.mrb[9].mxu1 }
 0x46b   :  { %v358_v52 = vpop.f32.mrb[10].mxu1 }
 0x46c   :  { %739 = vtanh.f32 %v356_v50  ;;  %v688_v53 = vpop.f32.mrb[11].mxu1 }
 0x476   :  { %v740_v54 = vpop.eup %739 }
 0x477   :  { %362 = vst.msk [vmem:[#allocation2 + $0x8] sm:$0x3] %vm170_vm5, %v740_v54  ;;  %v363_v55 = vpack.c.bf16 %v740_v54, %v740_v54 }
 0x479   :  { %694 = vmatmul.mubr.msk.bf16.vlgmr.msra.gmra.mrb[12].mxu0 %vm125_vm3, %v363_v55 }
 0x47a   :  { %706 = vmatpush3.bf16.msra.mxu0 %v823_v0  ;;  %709 = vmatprep.mubr.msk.bf16.mxu0 %vm773_vm2, %v771_v1  ;;  %v413_v0 = vrot.slane %v866_v20, 4 }
 0x47b   :  { %707 = vmatprep.subr.bf16.mxu0 %v771_v1 }
 0x47e   :  { %708 = vmatpush3.bf16.msra.mxu0 %v834_v3 }
 0x54c   :  { %v404_v57 = vpop.f32.mrb[12].mxu0 }
 0x54d   :  { %v405_v58 = vadd.f32 %v404_v57, %v365_v56  ;;  %v695_v59 = vpop.f32.mrb[13].mxu0 }
 0x54e   :  { %v407_v60 = vpop.f32.mrb[14].mxu0 }
 0x54f   :  { %741 = vtanh.f32 %v405_v58  ;;  %v696_v61 = vpop.f32.mrb[15].mxu0 }
 0x559   :  { %v742_v62 = vpop.eup %741 }
 0x55a   :  { %411 = vst.msk [vmem:[#allocation2 + $0xa] sm:$0x3] %vm170_vm5, %v742_v62  ;;  %v412_v63 = vpack.c.bf16 %v742_v62, %v742_v62 }
 0x55c   :  { %702 = vmatmul.mubr.msk.bf16.vlgmr.msra.gmra.mrb[12].mxu1 %vm125_vm3, %v412_v63 }
 0x55d   :  { %717 = vmatprep.mubr.msk.bf16.mxu1 %vm773_vm2, %v771_v1  ;;  %714 = vmatpush3.bf16.msra.mxu1 %v729_v9 }
 0x55e   :  { %715 = vmatprep.subr.bf16.mxu1 %v771_v1 }
 0x561   :  { %716 = vmatpush3.bf16.msra.mxu1 %v730_v10 }
 0x62f   :  { %v452_v2 = vpop.f32.mrb[12].mxu1 }
 0x630   :  { %v453_v3 = vadd.f32 %v452_v2, %v413_v0  ;;  %v703_v4 = vpop.f32.mrb[13].mxu1 }
 0x631   :  { %v455_v5 = vpop.f32.mrb[14].mxu1 }
 0x632   :  { %743 = vtanh.f32 %v453_v3  ;;  %v704_v6 = vpop.f32.mrb[15].mxu1 }
 0x63c   :  { %v744_v7 = vpop.eup %743 }
 0x63d   :  { %459 = vst.msk [vmem:[#allocation2 + $0xc] sm:$0x3] %vm170_vm5, %v744_v7  ;;  %v460_v8 = vpack.c.bf16 %v744_v7, %v744_v7 }
 0x63f   :  { %710 = vmatmul.mubr.msk.bf16.vlgmr.msra.gmra.mrb[16].mxu0 %vm125_vm3, %v460_v8 }
 0x712   :  { %v500_v12 = vpop.f32.mrb[16].mxu0 }
 0x713   :  { %v501_v13 = vadd.f32 %v500_v12, %v461_v11  ;;  %v711_v14 = vpop.f32.mrb[17].mxu0 }
 0x714   :  { %v503_v15 = vpop.f32.mrb[18].mxu0 }
 0x715   :  { %745 = vtanh.f32 %v501_v13  ;;  %v712_v16 = vpop.f32.mrb[19].mxu0 }
 0x71f   :  { %v746_v17 = vpop.eup %745 }
 0x720   :  { %507 = vst.msk [vmem:[#allocation2 + $0xe] sm:$0x3] %vm170_vm5, %v746_v17  ;;  %508 = vst.msk [vmem:[#allocation3] sm:$0x3] %vm170_vm5, %v746_v17 }
 0x727   :  { %v510_v19 = vld [vmem:[#allocation2 + $0x8] sm:$0xff] }
 0x728   :  { %v511_v21 = vpack.c.bf16 %v510_v19, %v509_v18 }
 0x72a   :  { %718 = vmatmul.mubr.msk.bf16.vlgmr.msra.gmra.mrb[16].mxu1 %vm125_vm3, %v511_v21 }
 0x72b   :  { %758 = shalt.err (!%p755_p4)
}
 0x72c   :  { %s759_s20 = scalar_lea.hbm %s956_s8, 32 }
 0x72d   :  { %p760_p5 = scmp.ne.s32.totalorder %s956_s8, %s759_s20  ;;  %p763_p6 = scmp.lt.u32.totalorder %s759_s20, %s956_s8 }
 0x72f   :  { %p765_p7 = pnand %p763_p6, %p760_p5 }
 0x731   :  { %768 = shalt.err (!%p765_p7)
}
 0x732   :  { %589 = dma.vmem_to_hbm [thread:$0]  %s587_s16, 32, %s956_s8, [#allocation4]   ;;  %v610_v1 = vld [vmem:[%s954_s6] ss:$0 sm:$0xff]  ;;  %vm575_vm6 = vcmask 72704  }
 0x7fd   :  { %v568_v20 = vpop.f32.mrb[16].mxu1 }
 0x7fe   :  { %v569_v22 = vadd.f32 %v610_v1, %v568_v20  ;;  %v719_v23 = vpop.f32.mrb[17].mxu1 }
 0x7ff   :  { %v571_v24 = vpop.f32.mrb[18].mxu1 }
 0x800   :  { %576 = vst.msk [vmem:[%s955_s7] sm:$0xff] %vm575_vm6, %v569_v22  ;;  %v572_v25 = vadd.f32 %v610_v1, %v571_v24  ;;  %v720_v26 = vpop.f32.mrb[19].mxu1 }
 0x802   :  { %577 = vst.msk [vmem:[%s955_s7 + $0x8] sm:$0xff] %vm575_vm6, %v572_v25 }
 0x803   :  { %769 = dma.done.wait [#allocation4], 32  }
 0x804   :  { %770 = vsyncadd [#allocation4], 4294967264 }
 0x805   :  { %595 = vsyncpa [#allocation4], 1 }

</bundles_post_ra>
